<compile_context>
chip_gen: v7x
topology: tpu7x:2x2x1
jax: 0.10.0
libtpu: 0.0.40
codegen_flags: <defaults>
</compile_context>

<pallas_src>
import functools

import jax
import jax.numpy as jnp
from jax.experimental import pallas as pl
from jax.experimental.pallas import tpu as pltpu


def _round_up(x, m):
    return ((x + m - 1) // m) * m


def _word2vec_kernel(hid_ref, wt_ref, out_ref):
    """One grid step: one MXU matmul of the resident hidden rows vs a WT tile.

    hid_ref : VMEM [B_pad, E_pad] bf16  (resident: constant index_map)
    wt_ref  : VMEM [E_pad, TN]    bf16  (streamed vocab tile)
    out_ref : VMEM [B_pad, TN]    f32   (output vocab tile)
    """
    out_ref[...] = jnp.dot(
        hid_ref[...], wt_ref[...], preferred_element_type=jnp.float32
    ).astype(out_ref.dtype)


def prepare_word2vec_weights(w, wt, *, tn=1024):
    """One-time weight prep (call once at model init, NOT per forward).

    w  : [V, E] float  (PyTorch W.weight.T)
    wt : [E, V] float  (PyTorch WT.weight.T)
    Returns bf16 (w_p [V, E_pad], wt_p [E_pad, V_pad]) with
      E_pad = round_up(E, 16)   (bf16 sublane multiple, NOT 128)
      V_pad = round_up(V, tn)   (whole number of lane-dense vocab tiles)
    """
    V, E = w.shape
    assert wt.shape == (E, V)
    tn = max(128, 128 * (tn // 128))
    e_pad = _round_up(max(E, 16), 16)
    v_pad = _round_up(V, tn)
    w_p = jnp.zeros((V, e_pad), jnp.bfloat16).at[:, :E].set(w.astype(jnp.bfloat16))
    wt_p = jnp.zeros((e_pad, v_pad), jnp.bfloat16).at[:E, :V].set(
        wt.astype(jnp.bfloat16)
    )
    return w_p, wt_p


@functools.partial(jax.jit, static_argnames=("voc_size", "tn"))
def word2vec_forward_from_indices(idx, w_p, wt_p, *, voc_size, tn=1024):
    """idx: [B] int32, w_p: [V, E_pad] bf16, wt_p: [E_pad, V_pad] bf16
    -> [B, voc_size] float32."""
    (B,) = idx.shape
    V, e_pad = w_p.shape
    e_pad2, v_pad = wt_p.shape
    assert e_pad == e_pad2

    tn = max(128, 128 * (tn // 128))
    assert v_pad % tn == 0, "tn must match the tile size used in prepare_word2vec_weights"
    num_tiles = v_pad // tn

    b_pad = _round_up(max(B, 16), 16)  # full bf16 vreg pack on the LHS

    # Tiny XLA gather of the B center-word embedding rows (hoisted out of the
    # kernel; identical on every vocab tile so it is done exactly once and the
    # result stays VMEM-resident across the whole grid). Clamp defends against
    # out-of-range indices; padded batch rows are zero and sliced off below.
    idx_c = jnp.clip(idx.astype(jnp.int32), 0, V - 1)
    hid = jnp.zeros((b_pad, e_pad), jnp.bfloat16).at[:B, :].set(w_p[idx_c])

    wt_bytes = e_pad * v_pad * 2
    hid_bytes = b_pad * e_pad * 2
    out_bytes = b_pad * v_pad * 4

    out_pad = pl.pallas_call(
        _word2vec_kernel,
        out_shape=jax.ShapeDtypeStruct((b_pad, v_pad), jnp.float32),
        grid=(num_tiles,),
        in_specs=[
            # Resident hidden layer: same (0, 0) block for every grid step.
            pl.BlockSpec((b_pad, e_pad), lambda j: (0, 0)),
            # Streamed lane-dense WT vocab tile.
            pl.BlockSpec((e_pad, tn), lambda j: (0, j)),
        ],
        out_specs=pl.BlockSpec((b_pad, tn), lambda j: (0, j)),
        compiler_params=pltpu.CompilerParams(
            # Vocab tiles are fully independent -> megacore-safe on v7x.
            dimension_semantics=("parallel",),
            vmem_limit_bytes=64 * 1024 * 1024,
        ),
        cost_estimate=pl.CostEstimate(
            flops=2 * b_pad * e_pad * v_pad,
            transcendentals=0,
            bytes_accessed=wt_bytes + hid_bytes + out_bytes,
        ),
    )(hid, wt_p)

    return out_pad[:B, :voc_size]


def word2vec_forward(x_onehot, w_p, wt_p, *, voc_size, tn=1024):
    """Same semantics as the PyTorch forward for skip-gram one-hot inputs X."""
    # Skip-gram X rows are one-hot, so X @ W == W[argmax(X)]: recover the
    # center-word index and let the wrapper gather instead of matmul-ing.
    idx = jnp.argmax(x_onehot, axis=-1).astype(jnp.int32)
    return word2vec_forward_from_indices(idx, w_p, wt_p, voc_size=voc_size, tn=tn)


if __name__ == "__main__":
    # Small shapes consistent with the module (tiny skip-gram vocab), but
    # large enough to span more than one vocab tile with tn=128.
    batch_size = 8
    voc_size = 200
    embedding_size = 16
    tn = 128  # small tile for the demo so the grid has >1 step

    key = jax.random.PRNGKey(0)
    k_w, k_wt, k_idx = jax.random.split(key, 3)

    W = jax.random.normal(k_w, (voc_size, embedding_size), dtype=jnp.float32) * 0.1
    WT = jax.random.normal(k_wt, (embedding_size, voc_size), dtype=jnp.float32) * 0.1

    # One-time weight prep (padding + bf16 cast), outside the per-call path.
    W_p, WT_p = prepare_word2vec_weights(W, WT, tn=tn)

    # One-hot center-word inputs, as in the original skip-gram training batch.
    idx = jax.random.randint(k_idx, (batch_size,), 0, voc_size)
    X = jax.nn.one_hot(idx, voc_size, dtype=jnp.float32)  # [batch, voc_size]

    out = word2vec_forward(X, W_p, WT_p, voc_size=voc_size, tn=tn)
    out = jax.block_until_ready(out)

    # Sanity check against plain-JAX f32 reference (bf16 weights in-kernel,
    # so tolerance is loosened accordingly).
    ref = (X @ W) @ WT
    assert out.shape == (batch_size, voc_size)
    assert jnp.allclose(out, ref, atol=2e-2, rtol=2e-2), float(
        jnp.max(jnp.abs(out - ref))
    )

    print("KERNEL_OK")
</pallas_src>

<mosaic_0001>
module attributes {stable_mosaic.version = 11 : i64} {
  func.func @_word2vec_kernel(%arg0: i32, %arg1: memref<16x16xbf16, #tpu.memory_space<vmem>>, %arg2: memref<16x128xbf16, #tpu.memory_space<vmem>>, %arg3: memref<16x128xf32, #tpu.memory_space<vmem>>) attributes {dimension_semantics = [#tpu.dimension_semantics<parallel>], iteration_bounds = array<i64: 2>, scalar_prefetch = 0 : i64, scratch_operands = 0 : i64, tpu.core_type = #tpu.core_type<tc>, window_params = [{pipeline_mode = #tpu.pipeline_mode<synchronous>, transform_indices = @transform_0, window_bounds = array<i64: 16, 16>}, {transform_indices = @transform_1, window_bounds = array<i64: 16, 128>}, {transform_indices = @transform_2, window_bounds = array<i64: 16, 128>}]} {
    %c0 = arith.constant 0 : index
    %c0_0 = arith.constant 0 : index
    %0 = vector.load %arg1[%c0, %c0_0] : memref<16x16xbf16, #tpu.memory_space<vmem>>, vector<16x16xbf16>
    %c0_1 = arith.constant 0 : index
    %c0_2 = arith.constant 0 : index
    %1 = vector.load %arg2[%c0_1, %c0_2] : memref<16x128xbf16, #tpu.memory_space<vmem>>, vector<16x128xbf16>
    %cst = arith.constant dense<0.000000e+00> : vector<16x128xf32>
    %2 = tpu.matmul %0, %1, %cst {dimension_numbers = #tpu.dot_dimension_numbers<[1], [0], [0], [1], [0, 0, 1, 1], [], []>} : vector<16x16xbf16>, vector<16x128xbf16>, vector<16x128xf32> -> vector<16x128xf32>
    %c0_3 = arith.constant 0 : index
    %c0_4 = arith.constant 0 : index
    %3 = vector.load %arg3[%c0_3, %c0_4] : memref<16x128xf32, #tpu.memory_space<vmem>>, vector<16x128xf32>
    tpu.vector_store %arg3[%c0_3, %c0_4], %2 {strides = array<i32>} : memref<16x128xf32, #tpu.memory_space<vmem>>, vector<16x128xf32>,
    return
  }
  func.func @transform_0(%arg0: i32) -> (i32, i32) {
    %c0_i32 = arith.constant 0 : i32
    %c0_i32_0 = arith.constant 0 : i32
    %c0_i32_1 = arith.constant 0 : i32
    return %c0_i32, %c0_i32_0 : i32, i32
  }
  func.func @transform_1(%arg0: i32) -> (i32, i32) {
    %c0_i32 = arith.constant 0 : i32
    %c0_i32_0 = arith.constant 0 : i32
    return %c0_i32, %arg0 : i32, i32
  }
  func.func @transform_2(%arg0: i32) -> (i32, i32) {
    %c0_i32 = arith.constant 0 : i32
    %c0_i32_0 = arith.constant 0 : i32
    return %c0_i32, %arg0 : i32, i32
  }
}

</mosaic_0001>

<bundles_post_ra>
// kernel: word2vec_forward_from_indices.1
= control target key start
LH: loop header
LB: loop body
LE: loop exit
PB: predicated region body
PF: predicated region fallthrough
CT: control target
= control target key end

     0   :  { %7 = vsyncpa [#allocation3], 0  ;;  %s791_s0 = inlined_call_operand.hbm [shape: bf16[16,16], index: 0, kind: input, shape index: {}]   ;;  %s792_s1 = inlined_call_operand.hbm [shape: bf16[16,256], index: 1, kind: input, shape index: {}]   ;;  %s793_s2 = inlined_call_operand.hbm [shape: f32[16,256], index: 2, kind: output, shape index: {}]  }
   0x1   :  { %8 = vsyncpa [#allocation6], 0 }
   0x2   :  { %10 = vsyncpa [#allocation6 + $0x1], 0 }
   0x3   :  { %11 = vsyncpa [#allocation4], 0 }
   0x4   :  { %13 = vsyncpa [#allocation4 + $0x1], 0  ;;  %s585_s9 = smov 0   ;;  %s587_s10 = smov 0  }
   0x5   :  { %s589_s11 = smov 0   ;;  %s591_s12 = smov 0  }
   0x6 LB: > { %s606_s13 = sadd.s32 4294967295, %s557_s12   ;;  %s337_s14 = sadd.s32 4294967294, %s557_s12   ;;  %s557_s12 = sphi %s591_s12, %s817_s12   ;;  %s553_s11 = sphi %s589_s11, %s816_s11   ;;  %s549_s10 = sphi %s587_s10, %s815_s10   ;;  %s545_s9 = sphi %s585_s9, %s814_s9  }
   0x7   : > { %s610_s15 = sadd.s32 1, %s557_s12   ;;  %s47_s16 = sadd.s32 1, %s553_s11 }
   0x8   : > { %s44_s17 = ssub.s32 %s557_s12, %s610_s15  ;;  %p54_p0 = scmp.ne.s32.totalorder %s553_s11, %s549_s10 }
   0x9   : > { %p45_p1 = scmp.eq.s32.totalorder %s44_s17, 0  ;;  %p55_p2 = scmp.eq.s32.totalorder %s557_s12, 0 }
   0xa   : > { %p60_p3 = scmp.ne.s32.totalorder %s549_s10, %s545_s9  ;;  %p794_p4 = scmp.eq.s32.totalorder %s606_s13, 0 }
   0xb   : > { %s622_s18 = scalar_select %p45_p1, %s553_s11, %s47_s16  }
   0xc   : > { %p624_p5 = por %p55_p2, %p54_p0  ;;  %p630_p6 = por %p794_p4, %p60_p3 }
   0xd   : > { %p84_p7 = scmp.eq.s32.totalorder %s606_s13, 1  ;;  %p90_p8 = scmp.eq.s32.totalorder %s337_s14, 1 }
   0xe   : > { %s798_s19 = scalar_select %p624_p5, 1, 0 }
   0xf   : > { %s799_s20 = scalar_select %p630_p6, 1, 0 }
  0x10   : > { %p338_p9 = scmp.ge.s32.totalorder %s557_s12, 1  ;;  %p97_p10 = scmp.lt.s32.totalorder %s557_s12, 3 }
  0x11   : > { %p637_p11 = por %p84_p7, %p54_p0  ;;  %p641_p12 = por %p90_p8, %p60_p3 }
  0x12   : > { %p645_p13 = pnand %p338_p9, %p97_p10  ;;  %s559_s24 = smov [#allocation2]  }
  0x13   : > { %s800_s21 = scalar_select %p637_p11, 1, 0 }
  0x14   : > { %s801_s22 = scalar_select %p641_p12, 1, 0 }
  0x15   : > { %s802_s23 = scalar_select %p645_p13, 1, 0 }
  0x16   : > { %p370_p1 = pneg %p645_p13  ;;  %s109_s25 = sshll.u32 %s559_s24, 4  ;;  %s110_s25 = int_to_ptr.vmem [resolvable:$true] %s109_s25 }
  0x17   : > { %s123_s27 = sand.u32 1, %s553_s11   ;;  %s429_s30 = scalar_lea.hbm %s791_s0, 128 }
  0x18   : > { %p653_p2 = pnand %p370_p1, %p794_p4  ;;  %p430_p7 = scmp.ne.s32.totalorder %s791_s0, %s429_s30 }
  0x19   : > { %p436_p1 = scmp.lt.u32.totalorder %s429_s30, %s791_s0 }
  0x1a   : > { %p431_p8 = pneg %p653_p2 }
  0x1c   : > { %p432_p9 = pnand %p431_p8, %p430_p7 }
  0x1e   : > { %p433_p10 = pneg %p432_p9 }
  0x20   : > { %p438_p4 = pnand %p436_p1, %p433_p10 }
  0x22   : > { %441 = shalt.err (!%p438_p4)
}
  0x23   : > { %s442_s7 = scalar_lea.vmem %s110_s25, 128  ;;  %p450_p11 = scmp.lt.s32.totalorder %s110_s25, %s110_s25 }
  0x24   : > { %p443_p0 = scmp.ne.s32.totalorder %s110_s25, %s442_s7  ;;  %p451_p6 = scmp.lt.s32.totalorder %s442_s7, %s442_s7 }
  0x26   : > { %p445_p3 = pnand %p443_p0, %p431_p8  ;;  %p452_p13 = por %p451_p6, %p450_p11 }
  0x28   : > { %p446_p12 = pneg %p445_p3 }
  0x2a   : > { %p453_p5 = pnand %p452_p13, %p446_p12 }
  0x2c   : > { %456 = shalt.err (!%p453_p5)
}
  0x2d   : > { %s560_s8 = smov 64   ;;  %s561_s14 = smov 4  }
  0x2e   : > { %373 = dma.hbm_to_vmem [thread:$0]  (!%p653_p2), %s791_s0, 128, %s110_s25, [#allocation3], %s560_s8, %s560_s8, %s561_s14  }
  0x2f   : > { %p804_p4 = scmp.ne.s32.totalorder %s798_s19, 0  ;;  %p805_p0 = scmp.lt.s32.totalorder %s557_s12, 2 }
  0x30   : > { %s341_s28 = sshll.u32 %s123_s27, 3  ;;  %s342_s29 = sshll.u32 %s557_s12, 6 }
  0x31   : > { %p683_p3 = pnand %p805_p0, %p804_p4  ;;  %s691_s26 = scalar_lea.hbm %s792_s1, %s342_s29 }
  0x32   : > { %s127_s25 = scalar_lea.vmem [#allocation5], %s341_s28  ;;  %s695_s4 = scalar_lea.sflag [#allocation6], %s123_s27 }
  0x33   : > { %s133_s19 = sshll.u32 %s127_s25, 4  ;;  %s457_s5 = scalar_lea.hbm %s691_s26, 128  ;;  %s693_s19 = int_to_ptr.vmem [resolvable:$true] %s133_s19 }
  0x34   : > { %p458_p5 = scmp.ne.s32.totalorder %s691_s26, %s457_s5  ;;  %p459_p6 = pneg %p683_p3 }
  0x35   : > { %s462_s16 = scalar_lea.hbm %s792_s1, 256  ;;  %p463_p13 = scmp.lt.u32.totalorder %s691_s26, %s792_s1 }
  0x36   : > { %p460_p11 = pnand %p459_p6, %p458_p5  ;;  %p464_p2 = scmp.lt.u32.totalorder %s462_s16, %s457_s5 }
  0x37   : > { %p466_p8 = scmp.lt.u32.totalorder %s457_s5, %s691_s26 }
  0x38   : > { %p461_p12 = pneg %p460_p11  ;;  %p465_p7 = por %p464_p2, %p463_p13 }
  0x3a   : > { %p467_p9 = por %p466_p8, %p465_p7 }
  0x3c   : > { %p468_p10 = pnand %p467_p9, %p461_p12 }
  0x3e   : > { %471 = shalt.err (!%p468_p10)
}
  0x3f   : > { %s472_s27 = scalar_lea.vmem %s693_s19, 128  ;;  %s562_s28 = smov [#allocation5]  }
  0x40   : > { %p473_p1 = scmp.ne.s32.totalorder %s693_s19, %s472_s27  ;;  %s477_s30 = sshll.u32 %s562_s28, 4  ;;  %s478_s30 = int_to_ptr.vmem [resolvable:$false] %s477_s30 }
  0x41   : > { %s479_s3 = scalar_lea.vmem %s478_s30, 256  ;;  %p480_p5 = scmp.lt.s32.totalorder %s693_s19, %s478_s30 }
  0x42   : > { %p475_p4 = pnand %p473_p1, %p459_p6  ;;  %p481_p11 = scmp.lt.s32.totalorder %s479_s3, %s472_s27 }
  0x44   : > { %p476_p0 = pneg %p475_p4  ;;  %p482_p13 = por %p481_p11, %p480_p5 }
  0x46   : > { %p483_p2 = pnand %p482_p13, %p476_p0 }
  0x48   : > { %486 = shalt.err (!%p483_p2)
}
  0x49   : > { %s563_s25 = smov 128   ;;  %p807_p6 = scmp.ne.s32.totalorder %s802_s23, 0 }
  0x4a   : > { %377 = dma.hbm_to_vmem [thread:$0]  (!%p683_p3), %s691_s26, 128, %s693_s19, %s695_s4, %s563_s25, %s560_s8, %s561_s14  }
  0x4b   : > { %145 = sbr.rel (%p807_p6) target bundleno = 322 (0x142), region = 28  ;;  %p808_p12 = scmp.eq.s32.totalorder (!%p807_p6), %s606_s13, 0 }
  0x52   : > { %532 = dma.done.wait (%p808_p12), [#allocation3], 128   ;;  %p809_p7 = pmov %p808_p12 }
  0x53   : > { %s732_s5 = sand.u32 1, %s549_s10   ;;  %p810_p8 = scmp.ne.s32.totalorder %s799_s20, 0 }
  0x54   : > { %534 = vsyncadd (%p809_p7), [#allocation3], 4294967168  ;;  %s345_s24 = sshll.u32 %s732_s5, 3  ;;  %s152_s6 = scalar_lea.sflag [#allocation6], %s732_s5 }
  0x55   : > { %s155_s7 = scalar_lea.vmem [#allocation5], %s345_s24 }
  0x56   : > { %536 = dma.done.wait (%p810_p8), %s152_s6, 128  }
  0x57   : > { %538 = vsyncadd (%p810_p8), %s152_s6, 4294967168  ;;  %v564_v0 = vmov 0.0   ;;  %vm565_vm0 = vmmov 0   ;;  %v427_v1 = vld [vmem:[%s155_s7] sm:$0xff]   ;;  %v428_v2 = vld [vmem:[#allocation2] sm:$0xff]   ;;  %vm192_vm1 = vcmask 130048  }
  0x58   : > { %356 = vmatprep.subr.bf16.mxu0 %v564_v0  ;;  %358 = vmatprep.mubr.msk.bf16.mxu0 %vm565_vm0, %v564_v0  ;;  %s346_s23 = sshll.u32 %s732_s5, 4  ;;  %s351_s26 = sshll.u32 %s606_s13, 7 }
  0x59   : > { %357 = vmatpush3.bf16.msra.mxu0 %v427_v1  ;;  %s175_s8 = scalar_lea.vmem [#allocation7], %s346_s23  ;;  %s747_s4 = scalar_lea.hbm %s793_s2, %s351_s26 }
  0x5a   : > { %s252_s14 = sshll.u32 %s175_s8, 4  ;;  %s240_s16 = scalar_lea.sflag [#allocation4], %s732_s5  ;;  %s742_s14 = int_to_ptr.vmem [resolvable:$true] %s252_s14 }
  0x5b   : > { %s487_s17 = scalar_lea.vmem %s742_s14, 256  ;;  %p811_p9 = scmp.ne.s32.totalorder %s800_s21, 0 }
  0x5c   : > { %359 = vmatmul.mubr.msk.bf16.vlgmr.msra.gmra.mrb[0].mxu0 %vm192_vm1, %v428_v2  ;;  %p488_p3 = scmp.ne.s32.totalorder %s742_s14, %s487_s17  ;;  %s566_s13 = smov [#allocation7]  }
  0x5d   : > { %s491_s29 = sshll.u32 %s566_s13, 4  ;;  %s492_s29 = int_to_ptr.vmem [resolvable:$false] %s491_s29 }
  0x5e   : > { %p489_p10 = pnand %p488_p3, %p811_p9  ;;  %s493_s27 = scalar_lea.vmem %s492_s29, 512 }
  0x5f   : > { %p494_p4 = scmp.lt.s32.totalorder %s742_s14, %s492_s29  ;;  %p495_p0 = scmp.lt.s32.totalorder %s493_s27, %s487_s17 }
  0x60   : > { %p490_p1 = pneg %p489_p10 }
  0x61   : > { %p496_p5 = por %p495_p0, %p494_p4 }
  0x63   : > { %p497_p11 = pnand %p496_p5, %p490_p1 }
 0x12f   : > { %v230_v3 = vpop.f32.mrb[0].mxu0 }
 0x130   : > { %237 = vst [vmem:[%s175_s8] sm:$0xff] %v230_v3  ;;  %v360_v4 = vpop.f32.mrb[1].mxu0 }
 0x131   : > { %v233_v5 = vpop.f32.mrb[2].mxu0 }
 0x132   : > { %238 = vst [vmem:[%s175_s8 + $0x8] sm:$0xff] %v233_v5  ;;  %v361_v6 = vpop.f32.mrb[3].mxu0 }
 0x133   : > { %500 = shalt.err (!%p497_p11)
}
 0x134   : > { %s501_s28 = scalar_lea.hbm %s747_s4, 256  ;;  %s505_s25 = scalar_lea.hbm %s793_s2, 512 }
 0x135   : > { %p502_p13 = scmp.ne.s32.totalorder %s747_s4, %s501_s28  ;;  %p506_p12 = scmp.lt.u32.totalorder %s747_s4, %s793_s2 }
 0x136   : > { %p507_p7 = scmp.lt.u32.totalorder %s505_s25, %s501_s28  ;;  %p509_p3 = scmp.lt.u32.totalorder %s501_s28, %s747_s4 }
 0x137   : > { %p503_p2 = pnand %p502_p13, %p811_p9 }
 0x138   : > { %p508_p8 = por %p507_p7, %p506_p12 }
 0x139   : > { %p504_p6 = pneg %p503_p2 }
 0x13a   : > { %p510_p10 = por %p509_p3, %p508_p8 }
 0x13c   : > { %p511_p1 = pnand %p510_p10, %p504_p6 }
 0x13e   : > { %514 = shalt.err (!%p511_p1)
}
 0x13f   : > { %s567_s7 = smov 128   ;;  %s568_s23 = smov 256  }
 0x140   : > { %s569_s8 = smov 8  }
 0x141   : > { %368 = dma.vmem_to_hbm [thread:$0]  (%p811_p9), %s742_s14, 256, %s747_s4, %s240_s16, %s567_s7, %s568_s23, %s569_s8  }
 0x142 PF: > { %s267_s26 = sand.u32 1, %s545_s9   ;;  %p812_p4 = scmp.ne.s32.totalorder %s801_s22, 0 }
 0x143   : > { %p813_p0 = scmp.ge.s32.totalorder %s557_s12, 2  ;;  %s268_s20 = scalar_lea.sflag [#allocation4], %s267_s26 }
 0x145   : > { %p379_p5 = pnand %p813_p0, %p812_p4 }
 0x147   : > { %540 = dma.done.wait (!%p379_p5), %s268_s20, 256  }
 0x148   : > { %542 = vsyncadd (!%p379_p5), %s268_s20, 4294967040  ;;  %p16_p11 = scmp.ge.s32.totalorder %s610_s15, 4   ;;  %s814_s9 = smov %s549_s10 }
 0x149   : > { %s815_s10 = smov %s553_s11  ;;  %s816_s11 = smov %s622_s18 }
 0x14a   : > { %s817_s12 = smov %s610_s15  ;;  %18 = sbr.rel (!%p16_p11) target bundleno = 6 (0x6), region = 78 }
 0x151   :  { %273 = vsyncpa [#allocation3], 1 }
 0x152   :  { %275 = vsyncpa [#allocation3 + $0x1], 1 }
 0x153   :  { %276 = vsyncpa [#allocation6], 1 }
 0x154   :  { %278 = vsyncpa [#allocation6 + $0x1], 1 }
 0x155   :  { %279 = vsyncpa [#allocation4], 1 }
 0x156   :  { %281 = vsyncpa [#allocation4 + $0x1], 1 }

</bundles_post_ra>
